<compile_context>
chip_gen: v5e
topology: v5e:2x2
jax: 0.10.0
libtpu: 0.0.40
codegen_flags: <defaults>
</compile_context>

<pallas_src>
import jax
import jax.numpy as jnp
from jax.experimental import pallas as pl
from jax.experimental.pallas import tpu as pltpu


def _round_up(x, m):
    return (x + m - 1) // m * m


def _patch_embed_kernel(x_ref, w_ref, b_ref, o_ref):
    # x_ref: (tm, K)    bf16 patch rows          (pipelined per grid step)
    # w_ref: (K, Epad)  bf16 projection weight   (whole array, resident VMEM)
    # b_ref: (1, Epad)  f32 bias                 (whole array, resident VMEM)
    # o_ref: (tm, Epad) f32 output tile
    acc = jnp.dot(x_ref[...], w_ref[...], preferred_element_type=jnp.float32)
    o_ref[...] = (acc + b_ref[...]).astype(o_ref.dtype)


def patch_embed_matmul(patches, weight_ke, bias, *, tm=256,
                       compute_dtype=jnp.bfloat16, out_dtype=None):
    """patches: (M, K), weight_ke: (K, E), bias: (E,) -> (M, E)."""
    M, K = patches.shape
    Kw, E = weight_ke.shape
    assert Kw == K
    out_dtype = out_dtype or patches.dtype

    # Lane-dense output: pad E up to a multiple of 128 so stores are unmasked.
    Epad = _round_up(E, 128)

    # Row tile: as large as requested, but no larger than (padded) M; keep at
    # least 2 grid steps when M is large enough so v7x megacore has work on
    # both TensorCores (tiles stay >= 128 rows in that case).
    tm_eff = min(tm, _round_up(M, 8))
    if _round_up(M, tm_eff) // tm_eff < 2 and M >= 256:
        tm_eff = _round_up((M + 1) // 2, 8)
    Mp = _round_up(M, tm_eff)
    grid = (Mp // tm_eff,)

    x = patches.astype(compute_dtype)
    if Mp != M:
        x = jnp.pad(x, ((0, Mp - M), (0, 0)))
    w = weight_ke.astype(compute_dtype)
    b = bias.reshape(1, E).astype(jnp.float32)
    if Epad != E:
        w = jnp.pad(w, ((0, 0), (0, Epad - E)))
        b = jnp.pad(b, ((0, 0), (0, Epad - E)))

    in_bytes = Mp * K * x.dtype.itemsize
    w_bytes = K * Epad * w.dtype.itemsize
    b_bytes = Epad * 4
    out_bytes = Mp * Epad * jnp.dtype(out_dtype).itemsize
    cost = pl.CostEstimate(
        flops=2 * Mp * K * Epad,
        transcendentals=0,
        bytes_accessed=in_bytes + w_bytes + b_bytes + out_bytes,
    )

    # VMEM budget: double-buffered input tile + single weight/bias copies +
    # double-buffered output tile, plus slack for compiler scratch.  Capped at
    # 32 MiB so the same config is safe on v7x (64 MiB physical VMEM).
    vmem_bytes = (2 * tm_eff * K * x.dtype.itemsize
                  + w_bytes + b_bytes
                  + 2 * tm_eff * Epad * jnp.dtype(out_dtype).itemsize)
    vmem_limit = min(max(int(1.5 * vmem_bytes) + (4 << 20), 16 << 20), 32 << 20)

    out = pl.pallas_call(
        _patch_embed_kernel,
        out_shape=jax.ShapeDtypeStruct((Mp, Epad), out_dtype),
        grid_spec=pltpu.PrefetchScalarGridSpec(
            num_scalar_prefetch=0,
            grid=grid,
            in_specs=[
                pl.BlockSpec((tm_eff, K), lambda i: (i, 0)),
                # Weight / bias never change across the grid: keep exactly one
                # copy resident in VMEM instead of double-buffering them.
                pl.BlockSpec(memory_space=pltpu.MemorySpace.VMEM),
                pl.BlockSpec(memory_space=pltpu.MemorySpace.VMEM),
            ],
            out_specs=pl.BlockSpec((tm_eff, Epad), lambda i: (i, 0)),
        ),
        compiler_params=pltpu.CompilerParams(
            dimension_semantics=("parallel",),
            # Let XLA fuse the patch transpose/reshape/cast into the kernel's
            # input instead of materializing the (M, K) matrix in HBM.
            allow_input_fusion=[True, False, False],
            vmem_limit_bytes=vmem_limit,
        ),
        cost_estimate=cost,
    )(x, w, b)

    if Mp != M or Epad != E:
        out = out[:M, :E]
    return out


class PatchEmbedPallas:
    """JAX/Pallas equivalent of the PyTorch PatchEmbed module."""

    def __init__(self, img_size=16, patch_size=8, in_chans=4, embed_dim=32,
                 num_frames=2, tubelet_size=1, row_tile=256, key=None):
        self.img_size = (img_size, img_size)
        self.patch_size = (patch_size, patch_size)
        self.tubelet_size = tubelet_size
        self.grid_size = (num_frames // tubelet_size,
                          img_size // patch_size,
                          img_size // patch_size)
        self.num_patches = self.grid_size[0] * self.grid_size[1] * self.grid_size[2]
        self.num_img_patches = self.grid_size[1] * self.grid_size[2]
        self.in_chans = in_chans
        self.embed_dim = embed_dim
        self.row_tile = row_tile  # sweepable MXU row tile

        # Conv3d parameters, deterministically initialized (PyTorch-style
        # uniform(-bound, bound) with bound = 1/sqrt(fan_in)).
        if key is None:
            key = jax.random.PRNGKey(0)
        kw, kb = jax.random.split(key)
        fan_in = in_chans * tubelet_size * patch_size * patch_size
        bound = 1.0 / (fan_in ** 0.5)
        # weight layout matches torch Conv3d: (E, C, kt, kh, kw)
        self.weight = jax.random.uniform(
            kw, (embed_dim, in_chans, tubelet_size, patch_size, patch_size),
            dtype=jnp.float32, minval=-bound, maxval=bound)
        self.bias = jax.random.uniform(
            kb, (embed_dim,), dtype=jnp.float32, minval=-bound, maxval=bound)

        # norm_layer=None -> Identity
        # TODO(synk): add LayerNorm kernel if norm_layer is specified.

    def __call__(self, x):
        """x: (B, C, T, H, W) float32 -> (B, T', H'*W', E)."""
        B, C, T, H, W = x.shape
        tub = self.tubelet_size
        ph, pw = self.patch_size
        Tp, Hp, Wp = T // tub, H // ph, W // pw
        E = self.embed_dim
        K = C * tub * ph * pw

        # Patch extraction (layout glue, plain JAX; fusable into pallas_call).
        # (B, C, T, H, W) -> (B, C, Tp, tub, Hp, ph, Wp, pw)
        xr = x.reshape(B, C, Tp, tub, Hp, ph, Wp, pw)
        # -> (B, Tp, Hp, Wp, C, tub, ph, pw): patch-inner order (c, kt, kh, kw)
        xr = xr.transpose(0, 2, 4, 6, 1, 3, 5, 7)
        patches = xr.reshape(B * Tp * Hp * Wp, K)

        # Conv weight (E, C, kt, kh, kw) -> (K, E) with matching inner order.
        w_ke = self.weight.reshape(E, K).T

        out_flat = patch_embed_matmul(patches, w_ke, self.bias,
                                      tm=self.row_tile)  # (M, E)

        # Equivalent of conv -> flatten(3) -> permute(0, 2, 3, 1)
        return out_flat.reshape(B, Tp, Hp * Wp, E)


def _reference(x, weight, bias, tubelet, ph, pw):
    """Pure-JAX reference using conv_general_dilated (matches torch Conv3d)."""
    out = jax.lax.conv_general_dilated(
        x, weight,
        window_strides=(tubelet, ph, pw),
        padding="VALID",
        dimension_numbers=("NCDHW", "OIDHW", "NCDHW"),
    ) + bias.reshape(1, -1, 1, 1, 1)
    B, E, Tp, Hp, Wp = out.shape
    return out.reshape(B, E, Tp, Hp * Wp).transpose(0, 2, 3, 1)


if __name__ == "__main__":
    # Small shapes consistent with the module: batch=2, chans=4, frames=2,
    # spatial=16, patch=8, embed_dim=32.
    B, C, T, H, W = 2, 4, 2, 16, 16
    module = PatchEmbedPallas(img_size=16, patch_size=8, in_chans=C,
                              embed_dim=32, num_frames=T, tubelet_size=1,
                              key=jax.random.PRNGKey(0))

    x = jax.random.normal(jax.random.PRNGKey(0), (B, C, T, H, W), jnp.float32)

    fwd = jax.jit(module.__call__)
    out = jax.block_until_ready(fwd(x))

    ref = _reference(x, module.weight, module.bias, module.tubelet_size,
                     module.patch_size[0], module.patch_size[1])
    assert out.shape == (B, T, (H // 8) * (W // 8), 32), out.shape
    # bf16 matmul inputs (f32 accumulation) -> looser tolerance vs f32 conv ref.
    assert jnp.allclose(out, ref, atol=2e-2, rtol=2e-2), "mismatch vs reference"

    print("KERNEL_OK")
</pallas_src>

<mosaic_0001>
module attributes {stable_mosaic.version = 11 : i64} {
  func.func @_patch_embed_kernel(%arg0: i32, %arg1: memref<16x256xbf16, #tpu.memory_space<vmem>>, %arg2: memref<256x128xbf16, #tpu.memory_space<vmem>>, %arg3: memref<1x128xf32, #tpu.memory_space<vmem>>, %arg4: memref<16x128xf32, #tpu.memory_space<vmem>>) attributes {dimension_semantics = [#tpu.dimension_semantics<parallel>], iteration_bounds = array<i64: 1>, scalar_prefetch = 0 : i64, scratch_operands = 0 : i64, tpu.core_type = #tpu.core_type<tc>, window_params = [{transform_indices = @transform_0, window_bounds = array<i64: 16, 256>}, {pipeline_mode = #tpu.pipeline_mode<synchronous>, transform_indices = @transform_1, window_bounds = array<i64: 256, 128>}, {pipeline_mode = #tpu.pipeline_mode<synchronous>, transform_indices = @transform_2, window_bounds = array<i64: 1, 128>}, {transform_indices = @transform_3, window_bounds = array<i64: 16, 128>}]} {
    %c0 = arith.constant 0 : index
    %c0_0 = arith.constant 0 : index
    %0 = vector.load %arg1[%c0, %c0_0] : memref<16x256xbf16, #tpu.memory_space<vmem>>, vector<16x256xbf16>
    %c0_1 = arith.constant 0 : index
    %c0_2 = arith.constant 0 : index
    %1 = vector.load %arg2[%c0_1, %c0_2] : memref<256x128xbf16, #tpu.memory_space<vmem>>, vector<256x128xbf16>
    %cst = arith.constant dense<0.000000e+00> : vector<16x128xf32>
    %2 = tpu.matmul %0, %1, %cst {dimension_numbers = #tpu.dot_dimension_numbers<[1], [0], [0], [1], [0, 0, 1, 1], [], []>} : vector<16x256xbf16>, vector<256x128xbf16>, vector<16x128xf32> -> vector<16x128xf32>
    %c0_3 = arith.constant 0 : index
    %c0_4 = arith.constant 0 : index
    %3 = vector.load %arg3[%c0_3, %c0_4] : memref<1x128xf32, #tpu.memory_space<vmem>>, vector<1x128xf32>
    %4 = vector.broadcast %3 : vector<1x128xf32> to vector<16x128xf32>
    %5 = arith.addf %2, %4 : vector<16x128xf32>
    %c0_5 = arith.constant 0 : index
    %c0_6 = arith.constant 0 : index
    %6 = vector.load %arg4[%c0_5, %c0_6] : memref<16x128xf32, #tpu.memory_space<vmem>>, vector<16x128xf32>
    tpu.vector_store %arg4[%c0_5, %c0_6], %5 {strides = array<i32>} : memref<16x128xf32, #tpu.memory_space<vmem>>, vector<16x128xf32>,
    return
  }
  func.func @transform_0(%arg0: i32) -> (i32, i32) {
    %c0_i32 = arith.constant 0 : i32
    %c0_i32_0 = arith.constant 0 : i32
    return %arg0, %c0_i32 : i32, i32
  }
  func.func @transform_1(%arg0: i32) -> (i32, i32) {
    %c0_i32 = arith.constant 0 : i32
    %c0_i32_0 = arith.constant 0 : i32
    %c0_i32_1 = arith.constant 0 : i32
    return %c0_i32, %c0_i32_0 : i32, i32
  }
  func.func @transform_2(%arg0: i32) -> (i32, i32) {
    %c0_i32 = arith.constant 0 : i32
    %c0_i32_0 = arith.constant 0 : i32
    %c0_i32_1 = arith.constant 0 : i32
    return %c0_i32, %c0_i32_0 : i32, i32
  }
  func.func @transform_3(%arg0: i32) -> (i32, i32) {
    %c0_i32 = arith.constant 0 : i32
    %c0_i32_0 = arith.constant 0 : i32
    return %arg0, %c0_i32 : i32, i32
  }
}

</mosaic_0001>

<bundles_post_ra>
// kernel: a_call__.1
= control target key start
LH: loop header
LB: loop body
LE: loop exit
PB: predicated region body
PF: predicated region fallthrough
CT: control target
= control target key end

     0   :  { %s416_s0 = inlined_call_operand.vmem [shape: bf16[16,256], index: 0, kind: input, shape index: {}]   ;;  %s417_s1 = inlined_call_operand.vmem [shape: bf16[256,128], index: 1, kind: input, shape index: {}]   ;;  %s418_s2 = inlined_call_operand.vmem [shape: f32[1,128], index: 2, kind: input, shape index: {}]   ;;  %s419_s3 = inlined_call_operand.hbm [shape: f32[16,128], index: 3, kind: output, shape index: {}]  }
   0x1   :  { %v288_v0 = vld [vmem:[%s417_s1 + $0x38] sm:$0xff]  ;;  %v287_v2 = vld [vmem:[%s417_s1 + $0x30] sm:$0xff]  ;;  %v286_v4 = vld [vmem:[%s417_s1 + $0x28] sm:$0xff] }
   0x2   :  { %v296_v1 = vld [vmem:[%s417_s1 + $0x78] sm:$0xff]  ;;  %159 = vmatpush.bf16.msra.mxu0 %v288_v0  ;;  %v295_v3 = vld [vmem:[%s417_s1 + $0x70] sm:$0xff]  ;;  %v294_v5 = vld [vmem:[%s417_s1 + $0x68] sm:$0xff] }
   0x3   :  { %173 = vmatpush.bf16.msra.mxu1 %v296_v1 }
   0x6   :  { %160 = vmatpush.bf16.msra.mxu0 %v287_v2 }
   0x7   :  { %174 = vmatpush.bf16.msra.mxu1 %v295_v3 }
   0x8   :  { %8 = vsyncpa [#allocation3], 0  ;;  %v285_v6 = vld [vmem:[%s417_s1 + $0x20] sm:$0xff]  ;;  %v284_v8 = vld [vmem:[%s417_s1 + $0x18] sm:$0xff]  ;;  %s327_s26 = smov [#allocation2]   ;;  %s328_s30 = smov 128  }
   0x9   :  { %v293_v7 = vld [vmem:[%s417_s1 + $0x60] sm:$0xff]  ;;  %v292_v9 = vld [vmem:[%s417_s1 + $0x58] sm:$0xff]  ;;  %v283_v10 = vld [vmem:[%s417_s1 + $0x10] sm:$0xff]  ;;  %s193_s27 = sshll.u32 %s327_s26, 4  ;;  %s194_s27 = int_to_ptr.vmem [resolvable:$true] %s193_s27 }
   0xa   :  { %161 = vmatpush.bf16.msra.mxu0 %v286_v4  ;;  %v291_v11 = vld [vmem:[%s417_s1 + $0x50] sm:$0xff]  ;;  %v282_v12 = vld [vmem:[%s417_s1 + $0x8] sm:$0xff]  ;;  %v281_v14 = vld [vmem:[%s417_s1] sm:$0xff] }
   0xb   :  { %175 = vmatpush.bf16.msra.mxu1 %v294_v5  ;;  %v290_v13 = vld [vmem:[%s417_s1 + $0x48] sm:$0xff]  ;;  %v289_v15 = vld [vmem:[%s417_s1 + $0x40] sm:$0xff] }
   0xc   :  { %v209_v16 = vld [vmem:[%s416_s0] sm:$0xf]  ;;  %v280_v17 = vld [vmem:[%s416_s0 + $0x4] sm:$0xf0]  ;;  %v279_v18 = vld [vmem:[%s416_s0 + $0x4] sm:$0xf] }
   0xd   :  { %v211_v19 = vld [vmem:[%s416_s0 + $0x8] sm:$0xf0]  ;;  %v210_v20 = vor.u32 %v280_v17, %v209_v16  ;;  %v300_v22 = vld [vmem:[%s418_s2] ss:$0 sm:$0xff]  ;;  %s195_s0 = sshll.u32 %s419_s3, 4  ;;  %s329_s2 = smov 8   ;;  %s196_s0 = int_to_ptr.hbm [resolvable:$true] %s195_s0 }
   0xe   :  { %162 = vmatpush.bf16.msra.mxu0 %v285_v6  ;;  %v214_v21 = vor.u32 %v279_v18, %v211_v19 }
   0xf   :  { %176 = vmatpush.bf16.msra.mxu1 %v293_v7 }
  0x12   :  { %163 = vmatpush.bf16.msra.mxu0 %v284_v8 }
  0x13   :  { %177 = vmatpush.bf16.msra.mxu1 %v292_v9 }
  0x16   :  { %164 = vmatpush.bf16.msra.mxu0 %v283_v10 }
  0x17   :  { %178 = vmatpush.bf16.msra.mxu1 %v291_v11 }
  0x1a   :  { %165 = vmatpush.bf16.msra.mxu0 %v282_v12 }
  0x1b   :  { %179 = vmatpush.bf16.msra.mxu1 %v290_v13 }
  0x1e   :  { %166 = vmatpush.bf16.msra.mxu0 %v281_v14 }
  0x1f   :  { %180 = vmatpush.bf16.msra.mxu1 %v289_v15 }
  0x21   :  { %167 = vmatmul.bf16.vlgmr.msra.gmra.mxu0 %v210_v20 }
  0x22   :  { %181 = vmatmul.bf16.vlgmr.msra.gmra.mxu1 %v214_v21 }
  0x9e   :  { %v168_v23 = vpop.f32.mrf.mxu0 }
  0x9f   :  { %v182_v24 = vpop.f32.mrf.mxu1  ;;  %v169_v25 = vadd.f32 %v300_v22, %v168_v23 }
  0xa1   :  { %v183_v26 = vadd.f32 %v182_v24, %v169_v25 }
  0xa3   :  { %187 = vst [vmem:[#allocation2] sm:$0xff] %v183_v26 }
  0xa6   :  { %v170_v27 = vpop.f32.mrf.mxu0 }
  0xa7   :  { %v171_v28 = vadd.f32 %v300_v22, %v170_v27  ;;  %v184_v29 = vpop.f32.mrf.mxu1 }
  0xa9   :  { %v185_v30 = vadd.f32 %v184_v29, %v171_v28 }
  0xab   :  { %188 = vst [vmem:[#allocation2 + $0x8] sm:$0xff] %v185_v30 }
  0xac   :  { %201 = dma.vmem_to_hbm [thread:$0]  %s194_s27, 256, %s196_s0, [#allocation3], %s328_s30, %s328_s30, %s329_s2  }
  0xad   :  { %325 = dma.done.wait [#allocation3], 256  }
  0xae   :  { %326 = vsyncadd [#allocation3], 4294967040 }
  0xaf   :  { %206 = vsyncpa [#allocation3], 1 }

</bundles_post_ra>
